<compile_context>
chip_gen: v7x
topology: tpu7x:2x2x1
jax: 0.10.0
libtpu: 0.0.40
codegen_flags: <defaults>
</compile_context>

<pallas_src>
import functools

import jax
import jax.numpy as jnp
from jax.experimental import pallas as pl
from jax.experimental.pallas import tpu as pltpu

EPS = 1e-5
_LANES = 128


def _dice_partial_kernel(pred_ref, gt_ref, out_ref, *,
                         rows_per_tile, total_rows, tiles_per_split, mask_tail):
    s = pl.program_id(0)   # parallel split (megacore axis on v7x)
    k = pl.program_id(1)   # sequential reduction over row tiles

    @pl.when(k == 0)
    def _():
        out_ref[...] = jnp.zeros(out_ref.shape, out_ref.dtype)

    p = jax.nn.sigmoid(pred_ref[...].astype(jnp.float32))
    g = gt_ref[...].astype(jnp.float32)

    if mask_tail:
        # Logical first row of this tile; for the tail tile(s) it may run past
        # the true row count (the DMA block index is clamped in the index_map),
        # so zero those rows instead of padding the inputs in HBM.
        row0 = (s * tiles_per_split + k) * rows_per_tile
        rows = row0 + jax.lax.broadcasted_iota(
            jnp.int32, (1, rows_per_tile, _LANES), 1)
        valid = rows < total_rows
        p = jnp.where(valid, p, 0.0)
        g = jnp.where(valid, g, 0.0)

    # Reduce only over the sublane (row) axis here; keep lanes dense. The lane
    # reduction and the dice/mean arithmetic are O(N) and done in the wrapper.
    out_ref[0, 0] += jnp.sum(g * p, axis=1)   # tp partials,            (N, 128)
    out_ref[0, 1] += jnp.sum(p + g, axis=1)   # (sum_p+sum_gt) partials, (N, 128)


def soft_dice_loss(y_pr, y_gt, *, eps=EPS, num_splits=2,
                   target_block_bytes=4 * 1024 * 1024):
    """1 - dice_coeff(y_pr, y_gt). Inputs: any shape with a leading batch dim.

    y_gt may be passed as bf16 / a binary mask dtype for less HBM traffic; it is
    upcast to f32 inside the kernel.
    """
    assert y_pr.shape == y_gt.shape
    n = y_pr.shape[0]
    pred = y_pr.reshape(n, -1)
    gt = y_gt.reshape(n, -1)
    f = pred.shape[1]

    # Lane dim must be 128. C*H*W is normally a multiple of 128; only when it
    # is not do we pay for a small lane-tail pad (<=127 elems per sample).
    lane_rem = f % _LANES
    if lane_rem:
        # TODO(synk): this fallback pad copies the inputs; avoided whenever
        # C*H*W % 128 == 0 (the common case).
        pad = _LANES - lane_rem
        pred = jnp.pad(pred, ((0, 0), (0, pad)), constant_values=-1e30)  # sigmoid->0
        gt = jnp.pad(gt, ((0, 0), (0, pad)), constant_values=0)
        f = pred.shape[1]

    rows = f // _LANES
    pred3 = pred.reshape(n, rows, _LANES)   # contiguous reshape: no copy
    gt3 = gt.reshape(n, rows, _LANES)

    # Row-tile size: multiple of 8 sublanes, sized so the f32 pred block is
    # ~target_block_bytes (or the full row extent if the input is small).
    tr_target = max(8, (target_block_bytes // (n * _LANES * 4)) // 8 * 8)
    tr = rows if tr_target >= rows else tr_target

    n_row_blocks = pl.cdiv(rows, tr)
    ns = max(1, min(num_splits, n_row_blocks))   # parallel splits (v7x: 2 TCs)
    kt = pl.cdiv(n_row_blocks, ns)               # row tiles per split
    mask_tail = (ns * kt * tr) != rows

    def in_map(s, k):
        # Clamp so the DMA always targets an in-bounds block; logically
        # out-of-range rows are zero-masked inside the kernel.
        return (0, jnp.minimum(s * kt + k, n_row_blocks - 1), 0)

    partials = pl.pallas_call(
        functools.partial(
            _dice_partial_kernel,
            rows_per_tile=tr,
            total_rows=rows,
            tiles_per_split=kt,
            mask_tail=mask_tail,
        ),
        out_shape=jax.ShapeDtypeStruct((ns, 2, n, _LANES), jnp.float32),
        grid_spec=pltpu.PrefetchScalarGridSpec(
            num_scalar_prefetch=0,
            grid=(ns, kt),
            in_specs=[
                pl.BlockSpec((n, tr, _LANES), in_map),
                pl.BlockSpec((n, tr, _LANES), in_map),
            ],
            out_specs=pl.BlockSpec((1, 2, n, _LANES), lambda s, k: (s, 0, 0, 0)),
        ),
        compiler_params=pltpu.CompilerParams(
            dimension_semantics=("parallel", "arbitrary"),
            vmem_limit_bytes=48 * 1024 * 1024,   # explicit; safe on v5e/v6e/v7x
        ),
    )(pred3, gt3)

    # O(N) finalize in plain JAX.
    tp = jnp.sum(partials[:, 0], axis=(0, 2))    # (N,)
    den = jnp.sum(partials[:, 1], axis=(0, 2))   # (N,)  == 2tp + fp + fn
    dice = (2.0 * tp + eps) / (den + eps)
    return 1.0 - jnp.sum(dice) / n


def _reference(y_pr, y_gt, eps=EPS):
    n = y_pr.shape[0]
    p = jax.nn.sigmoid(y_pr.astype(jnp.float32)).reshape(n, -1)
    g = y_gt.astype(jnp.float32).reshape(n, -1)
    tp = jnp.sum(g * p, axis=1)
    fp = jnp.sum(p, axis=1) - tp
    fn = jnp.sum(g, axis=1) - tp
    dice = (2 * tp + eps) / (2 * tp + fp + fn + eps)
    return 1.0 - jnp.sum(dice) / n


if __name__ == "__main__":
    key = jax.random.PRNGKey(0)
    k1, k2 = jax.random.split(key)
    # NCHW: batch=2, channels=4, spatial=16x16  -> F = 1024 per sample
    y_pr = jax.random.normal(k1, (2, 4, 16, 16), dtype=jnp.float32)
    y_gt = (jax.random.uniform(k2, (2, 4, 16, 16)) > 0.5).astype(jnp.float32)

    loss = jax.block_until_ready(soft_dice_loss(y_pr, y_gt))
    ref = jax.block_until_ready(_reference(y_pr, y_gt))
    assert jnp.allclose(loss, ref, rtol=1e-5, atol=1e-6), (loss, ref)

    # Narrow-dtype gt path (binary masks are exact in bf16): ~25% less HBM traffic.
    loss_bf16 = jax.block_until_ready(
        soft_dice_loss(y_pr, y_gt.astype(jnp.bfloat16)))
    assert jnp.allclose(loss_bf16, ref, rtol=1e-5, atol=1e-5), (loss_bf16, ref)

    print("KERNEL_OK")
</pallas_src>

<mosaic_0001>
module attributes {stable_mosaic.version = 11 : i64} {
  func.func @_dice_partial_kernel(%arg0: i32, %arg1: i32, %arg2: memref<2x8x128xf32, #tpu.memory_space<vmem>>, %arg3: memref<2x8x128xf32, #tpu.memory_space<vmem>>, %arg4: memref<1x2x2x128xf32, #tpu.memory_space<vmem>>) attributes {dimension_semantics = [#tpu.dimension_semantics<parallel>, #tpu.dimension_semantics<arbitrary>], iteration_bounds = array<i64: 1, 1>, scalar_prefetch = 0 : i64, scratch_operands = 0 : i64, tpu.core_type = #tpu.core_type<tc>, window_params = [{transform_indices = @transform_0, window_bounds = array<i64: 2, 8, 128>}, {transform_indices = @transform_1, window_bounds = array<i64: 2, 8, 128>}, {transform_indices = @transform_2, window_bounds = array<i64: 1, 2, 2, 128>}]} {
    %c0_i32 = arith.constant 0 : i32
    %0 = arith.cmpi eq, %arg1, %c0_i32 : i32
    %1 = arith.extui %0 : i1 to i32
    %c0_i32_0 = arith.constant 0 : i32
    %2 = arith.cmpi ne, %1, %c0_i32_0 : i32
    scf.if %2 {
      %cst_23 = arith.constant 0.000000e+00 : f32
      %26 = vector.broadcast %cst_23 : f32 to vector<1x2x2x128xf32>
      %c0_24 = arith.constant 0 : index
      %c0_25 = arith.constant 0 : index
      %c0_26 = arith.constant 0 : index
      %c0_27 = arith.constant 0 : index
      %27 = vector.load %arg4[%c0_24, %c0_25, %c0_26, %c0_27] : memref<1x2x2x128xf32, #tpu.memory_space<vmem>>, vector<1x2x2x128xf32>
      tpu.vector_store %arg4[%c0_24, %c0_25, %c0_26, %c0_27], %26 {strides = array<i32>} : memref<1x2x2x128xf32, #tpu.memory_space<vmem>>, vector<1x2x2x128xf32>,
    } else {
    }
    %c0 = arith.constant 0 : index
    %c0_1 = arith.constant 0 : index
    %c0_2 = arith.constant 0 : index
    %3 = vector.load %arg2[%c0, %c0_1, %c0_2] : memref<2x8x128xf32, #tpu.memory_space<vmem>>, vector<2x8x128xf32>
    %4 = arith.negf %3 : vector<2x8x128xf32>
    %5 = math.exp %4 : vector<2x8x128xf32>
    %cst = arith.constant 1.000000e+00 : f32
    %6 = vector.broadcast %cst : f32 to vector<2x8x128xf32>
    %7 = arith.addf %6, %5 : vector<2x8x128xf32>
    %8 = arith.divf %6, %7 : vector<2x8x128xf32>
    %c0_3 = arith.constant 0 : index
    %c0_4 = arith.constant 0 : index
    %c0_5 = arith.constant 0 : index
    %9 = vector.load %arg3[%c0_3, %c0_4, %c0_5] : memref<2x8x128xf32, #tpu.memory_space<vmem>>, vector<2x8x128xf32>
    %c0_6 = arith.constant 0 : index
    %c0_7 = arith.constant 0 : index
    %c0_8 = arith.constant 0 : index
    %c0_9 = arith.constant 0 : index
    %10 = vector.load %arg4[%c0_6, %c0_7, %c0_8, %c0_9] : memref<1x2x2x128xf32, #tpu.memory_space<vmem>>, vector<1x1x2x128xf32>
    %11 = vector.shape_cast %10 : vector<1x1x2x128xf32> to vector<2x128xf32>
    %12 = arith.mulf %9, %8 : vector<2x8x128xf32>
    %cst_10 = arith.constant dense<0.000000e+00> : vector<2x128xf32>
    %13 = vector.multi_reduction <add>, %12, %cst_10 [1] : vector<2x8x128xf32> to vector<2x128xf32>
    %14 = arith.addf %11, %13 : vector<2x128xf32>
    %c0_11 = arith.constant 0 : index
    %c0_12 = arith.constant 0 : index
    %c0_13 = arith.constant 0 : index
    %c0_14 = arith.constant 0 : index
    %15 = vector.load %arg4[%c0_11, %c0_12, %c0_13, %c0_14] : memref<1x2x2x128xf32, #tpu.memory_space<vmem>>, vector<1x1x2x128xf32>
    %16 = vector.shape_cast %15 : vector<1x1x2x128xf32> to vector<2x128xf32>
    %17 = vector.shape_cast %14 : vector<2x128xf32> to vector<1x1x2x128xf32>
    tpu.vector_store %arg4[%c0_11, %c0_12, %c0_13, %c0_14], %17 {strides = array<i32>} : memref<1x2x2x128xf32, #tpu.memory_space<vmem>>, vector<1x1x2x128xf32>,
    %c0_15 = arith.constant 0 : index
    %c1 = arith.constant 1 : index
    %c0_16 = arith.constant 0 : index
    %c0_17 = arith.constant 0 : index
    %18 = vector.load %arg4[%c0_15, %c1, %c0_16, %c0_17] : memref<1x2x2x128xf32, #tpu.memory_space<vmem>>, vector<1x1x2x128xf32>
    %19 = vector.shape_cast %18 : vector<1x1x2x128xf32> to vector<2x128xf32>
    %20 = arith.addf %8, %9 : vector<2x8x128xf32>
    %cst_18 = arith.constant dense<0.000000e+00> : vector<2x128xf32>
    %21 = vector.multi_reduction <add>, %20, %cst_18 [1] : vector<2x8x128xf32> to vector<2x128xf32>
    %22 = arith.addf %19, %21 : vector<2x128xf32>
    %c0_19 = arith.constant 0 : index
    %c1_20 = arith.constant 1 : index
    %c0_21 = arith.constant 0 : index
    %c0_22 = arith.constant 0 : index
    %23 = vector.load %arg4[%c0_19, %c1_20, %c0_21, %c0_22] : memref<1x2x2x128xf32, #tpu.memory_space<vmem>>, vector<1x1x2x128xf32>
    %24 = vector.shape_cast %23 : vector<1x1x2x128xf32> to vector<2x128xf32>
    %25 = vector.shape_cast %22 : vector<2x128xf32> to vector<1x1x2x128xf32>
    tpu.vector_store %arg4[%c0_19, %c1_20, %c0_21, %c0_22], %25 {strides = array<i32>} : memref<1x2x2x128xf32, #tpu.memory_space<vmem>>, vector<1x1x2x128xf32>,
    return
  }
  func.func @transform_0(%arg0: i32, %arg1: i32) -> (i32, i32, i32) {
    %c1_i32 = arith.constant 1 : i32
    %0 = arith.muli %arg0, %c1_i32 : i32
    %1 = arith.addi %0, %arg1 : i32
    %c0_i32 = arith.constant 0 : i32
    %2 = arith.minsi %1, %c0_i32 : i32
    %c0_i32_0 = arith.constant 0 : i32
    %c0_i32_1 = arith.constant 0 : i32
    %c0_i32_2 = arith.constant 0 : i32
    return %c0_i32_0, %2, %c0_i32_1 : i32, i32, i32
  }
  func.func @transform_1(%arg0: i32, %arg1: i32) -> (i32, i32, i32) {
    %c1_i32 = arith.constant 1 : i32
    %0 = arith.muli %arg0, %c1_i32 : i32
    %1 = arith.addi %0, %arg1 : i32
    %c0_i32 = arith.constant 0 : i32
    %2 = arith.minsi %1, %c0_i32 : i32
    %c0_i32_0 = arith.constant 0 : i32
    %c0_i32_1 = arith.constant 0 : i32
    %c0_i32_2 = arith.constant 0 : i32
    return %c0_i32_0, %2, %c0_i32_1 : i32, i32, i32
  }
  func.func @transform_2(%arg0: i32, %arg1: i32) -> (i32, i32, i32, i32) {
    %c0_i32 = arith.constant 0 : i32
    %c0_i32_0 = arith.constant 0 : i32
    %c0_i32_1 = arith.constant 0 : i32
    %c0_i32_2 = arith.constant 0 : i32
    return %arg0, %c0_i32, %c0_i32_0, %c0_i32_1 : i32, i32, i32, i32
  }
}

</mosaic_0001>

<bundles_post_ra>
// kernel: tpu_custom_call.1
= control target key start
LH: loop header
LB: loop body
LE: loop exit
PB: predicated region body
PF: predicated region fallthrough
CT: control target
= control target key end

     0   :  { %7 = vsyncpa [#allocation3], 0  ;;  %s293_s0 = inlined_call_operand.hbm [shape: f32[2,8,128], index: 0, kind: input, shape index: {}]   ;;  %s294_s1 = inlined_call_operand.hbm [shape: f32[2,8,128], index: 1, kind: input, shape index: {}]   ;;  %s295_s2 = inlined_call_operand.hbm [shape: f32[1,2,2,128], index: 2, kind: output, shape index: {}]  }
   0x1   :  { %8 = vsyncpa [#allocation6], 0 }
   0x2   :  { %9 = vsyncpa [#allocation4], 0  ;;  %s234_s9 = smov [#allocation2]   ;;  %s162_s13 = scalar_lea.hbm %s293_s0, 256 }
   0x3   :  { %s20_s10 = sshll.u32 %s234_s9, 4  ;;  %p163_p0 = scmp.ne.s32.totalorder %s293_s0, %s162_s13  ;;  %s21_s10 = int_to_ptr.vmem [resolvable:$true] %s20_s10 }
   0x4   :  { %p166_p1 = scmp.lt.u32.totalorder %s162_s13, %s293_s0 }
   0x6   :  { %p168_p2 = pnand %p166_p1, %p163_p0 }
   0x8   :  { %171 = shalt.err (!%p168_p2)
}
   0x9   :  { %s172_s18 = scalar_lea.vmem %s21_s10, 256  ;;  %p177_p4 = scmp.lt.s32.totalorder %s21_s10, %s21_s10 }
   0xa   :  { %p173_p3 = scmp.ne.s32.totalorder %s21_s10, %s172_s18  ;;  %p178_p5 = scmp.lt.s32.totalorder %s172_s18, %s172_s18 }
   0xc   :  { %p179_p6 = por %p178_p5, %p177_p4 }
   0xe   :  { %p180_p7 = pnand %p179_p6, %p173_p3 }
  0x10   :  { %183 = shalt.err (!%p180_p7)
}
  0x11   :  { %s235_s19 = smov 128   ;;  %s236_s20 = smov 8  }
  0x12   :  { %26 = dma.hbm_to_vmem [thread:$0]  %s293_s0, 256, %s21_s10, [#allocation3], %s235_s19, %s235_s19, %s236_s20  }
  0x13   :  { %s237_s23 = smov [#allocation5]   ;;  %s184_s27 = scalar_lea.hbm %s294_s1, 256 }
  0x14   :  { %s37_s24 = sshll.u32 %s237_s23, 4  ;;  %p185_p8 = scmp.ne.s32.totalorder %s294_s1, %s184_s27  ;;  %s38_s24 = int_to_ptr.vmem [resolvable:$true] %s37_s24 }
  0x15   :  { %p188_p9 = scmp.lt.u32.totalorder %s184_s27, %s294_s1 }
  0x17   :  { %p190_p10 = pnand %p188_p9, %p185_p8 }
  0x19   :  { %193 = shalt.err (!%p190_p10)
}
  0x1a   :  { %s194_s4 = scalar_lea.vmem %s38_s24, 256  ;;  %p199_p12 = scmp.lt.s32.totalorder %s38_s24, %s38_s24 }
  0x1b   :  { %p195_p11 = scmp.ne.s32.totalorder %s38_s24, %s194_s4  ;;  %p200_p13 = scmp.lt.s32.totalorder %s194_s4, %s194_s4 }
  0x1d   :  { %p201_p0 = por %p200_p13, %p199_p12 }
  0x1f   :  { %p202_p1 = pnand %p201_p0, %p195_p11 }
  0x21   :  { %205 = shalt.err (!%p202_p1)
}
  0x22   :  { %43 = dma.hbm_to_vmem [thread:$0]  %s294_s1, 256, %s38_s24, [#allocation6], %s235_s19, %s235_s19, %s236_s20  }
  0x23   :  { %228 = dma.done.wait [#allocation3], 256  }
  0x24   :  { %229 = vsyncadd [#allocation3], 4294967040 }
  0x25   :  { %230 = dma.done.wait [#allocation6], 256  }
  0x26   :  { %231 = vsyncadd [#allocation6], 4294967040  ;;  %v238_v0 = vmov 0.0   ;;  %v62_v1 = vld [vmem:[#allocation2] sm:$0xff]  ;;  %v63_v2 = vld [vmem:[#allocation2 + $0x8] sm:$0xff]  ;;  %vm95_vm0 = vcmask 1041409  }
  0x27   :  { %60 = vst [vmem:[#allocation7] sm:$0x3] %v238_v0  ;;  %61 = vst [vmem:[#allocation7 + $0x2] sm:$0x3] %v238_v0  ;;  %v144_v3 = vmul.f32 -1.442695, %v62_v1 }
  0x28   :  { %v145_v4 = vmul.f32 -1.442695, %v63_v2  ;;  %v76_v9 = vld [vmem:[#allocation5] sm:$0xff]  ;;  %v77_v10 = vld [vmem:[#allocation5 + $0x8] sm:$0xff]  ;;  %s239_s1 = smov [#allocation7]  }
  0x29   :  { %154 = vpow2.f32 %v144_v3  ;;  %s127_s6 = sshll.u32 %s239_s1, 4  ;;  %s128_s6 = int_to_ptr.vmem [resolvable:$true] %s127_s6 }
  0x2a   :  { %156 = vpow2.f32 %v145_v4  ;;  %s206_s7 = scalar_lea.vmem %s128_s6, 64  ;;  %p211_p3 = scmp.lt.s32.totalorder %s128_s6, %s128_s6 }
  0x2b   :  { %p207_p2 = scmp.ne.s32.totalorder %s128_s6, %s206_s7  ;;  %p212_p4 = scmp.lt.s32.totalorder %s206_s7, %s206_s7 }
  0x2d   :  { %p213_p5 = por %p212_p4, %p211_p3 }
  0x2e   :  { %v78_v39 = vld [vmem:[#allocation7] sm:$0x3]  ;;  %v101_v41 = vld [vmem:[#allocation7 + $0x2] sm:$0x3] }
  0x2f   :  { %p214_p6 = pnand %p213_p5, %p207_p2 }
  0x33   :  { %v155_v5 = vpop.eup %154 }
  0x34   :  { %v157_v6 = vpop.eup %156  ;;  %v70_v7 = vadd.f32 1.0, %v155_v5 }
  0x35   :  { %v71_v8 = vadd.f32 1.0, %v157_v6 }
  0x36   :  { %158 = vrcp.f32 %v70_v7 }
  0x37   :  { %160 = vrcp.f32 %v71_v8 }
  0x40   :  { %v159_v11 = vpop.eup %158 }
  0x41   :  { %v161_v12 = vpop.eup %160  ;;  %v79_v13 = vmul.f32 %v159_v11, %v76_v9  ;;  %v102_v14 = vadd.f32 %v159_v11, %v76_v9 }
  0x42   :  { %v80_v15 = vmul.f32 %v161_v12, %v77_v10  ;;  %v103_v16 = vadd.f32 %v161_v12, %v77_v10 }
  0x43   :  { %v81_v17 = vrot.slane %v79_v13, 4  ;;  %v104_v18 = vrot.slane %v102_v14, 4 }
  0x44   :  { %v87_v19 = vrot.slane %v80_v15, 4  ;;  %v110_v20 = vrot.slane %v103_v16, 4 }
  0x45   :  { %v82_v21 = vadd.f32 %v81_v17, %v79_v13  ;;  %v105_v22 = vadd.f32 %v104_v18, %v102_v14 }
  0x46   :  { %v88_v23 = vadd.f32 %v87_v19, %v80_v15  ;;  %v111_v24 = vadd.f32 %v110_v20, %v103_v16 }
  0x47   :  { %v83_v25 = vrot.slane %v82_v21, 2  ;;  %v106_v26 = vrot.slane %v105_v22, 2 }
  0x48   :  { %v89_v27 = vrot.slane %v88_v23, 2  ;;  %v112_v28 = vrot.slane %v111_v24, 2 }
  0x49   :  { %v84_v29 = vadd.f32 %v83_v25, %v82_v21  ;;  %v107_v30 = vadd.f32 %v106_v26, %v105_v22 }
  0x4a   :  { %v90_v31 = vadd.f32 %v89_v27, %v88_v23  ;;  %v113_v32 = vadd.f32 %v112_v28, %v111_v24 }
  0x4b   :  { %v85_v33 = vrot.slane %v84_v29, 1  ;;  %v108_v34 = vrot.slane %v107_v30, 1 }
  0x4c   :  { %v91_v35 = vrot.slane %v90_v31, 1  ;;  %v114_v36 = vrot.slane %v113_v32, 1 }
  0x4d   :  { %v86_v37 = vadd.f32 %v85_v33, %v84_v29  ;;  %v109_v38 = vadd.f32 %v108_v34, %v107_v30 }
  0x4e   :  { %v92_v40 = vadd.f32 %v91_v35, %v90_v31  ;;  %v115_v42 = vadd.f32 %v114_v36, %v113_v32 }
  0x50   :  { %v96_v43 = vsel %vm95_vm0, %v92_v40, %v86_v37  ;;  %v118_v44 = vsel %vm95_vm0, %v115_v42, %v109_v38 }
  0x51   :  { %v98_v45 = vadd.f32 %v96_v43, %v78_v39  ;;  %v120_v46 = vadd.f32 %v118_v44, %v101_v41 }
  0x53   :  { %99 = vst [vmem:[#allocation7] sm:$0x3] %v98_v45  ;;  %121 = vst [vmem:[#allocation7 + $0x2] sm:$0x3] %v120_v46 }
  0x54   :  { %217 = shalt.err (!%p214_p6)
}
  0x55   :  { %s218_s10 = scalar_lea.hbm %s295_s2, 64 }
  0x56   :  { %p219_p7 = scmp.ne.s32.totalorder %s295_s2, %s218_s10  ;;  %p222_p8 = scmp.lt.u32.totalorder %s218_s10, %s295_s2 }
  0x58   :  { %p224_p9 = pnand %p222_p8, %p219_p7 }
  0x5a   :  { %227 = shalt.err (!%p224_p9)
}
  0x5b   :  { %s240_s15 = smov 32   ;;  %s241_s16 = smov 2  }
  0x5c   :  { %133 = dma.vmem_to_hbm [thread:$0]  %s128_s6, 64, %s295_s2, [#allocation4], %s240_s15, %s240_s15, %s241_s16  }
  0x5d   :  { %232 = dma.done.wait [#allocation4], 64  }
  0x5e   :  { %233 = vsyncadd [#allocation4], 4294967232 }
  0x5f   :  { %137 = vsyncpa [#allocation3], 1 }
  0x60   :  { %138 = vsyncpa [#allocation6], 1 }
  0x61   :  { %139 = vsyncpa [#allocation4], 1 }

</bundles_post_ra>
